<compile_context>
chip_gen: v5e
topology: v5e:2x2
jax: 0.10.0
libtpu: 0.0.40
codegen_flags: <defaults>
</compile_context>

<pallas_src>
import jax
import jax.numpy as jnp
from jax.experimental import pallas as pl
from jax.experimental.pallas import tpu as pltpu


def _round_up(x: int, m: int) -> int:
    return ((x + m - 1) // m) * m


# ----------------------------- Pallas kernel ------------------------------ #
def _ddpm_gather_kernel(t_ref, tab_ref, o_ref):
    # t_ref   : (B,)         int32  SMEM (scalar prefetch), clamped timesteps
    # tab_ref : (2 * T_pad,) f32    SMEM  [0:T] = beta, [T_pad:T_pad+T] = alpha
    # o_ref   : (2 * B,)     f32    SMEM  [0:B] = beta[t], [B:2B] = alpha[t]
    b = t_ref.shape[0]
    t_pad = tab_ref.shape[0] // 2

    def body(i, carry):
        ti = t_ref[i]                      # scalar SMEM load (dynamic index)
        o_ref[i] = tab_ref[ti]             # beta[t_i]
        o_ref[b + i] = tab_ref[t_pad + ti] # alpha_bar[t_i]
        return carry

    # Short fixed trip counts unroll for LLO visibility; large B stays a loop.
    jax.lax.fori_loop(0, b, body, 0, unroll=(b <= 32))


def ddpm_gather(t, table_flat, num_time_steps: int, t_pad: int):
    """Gather (beta[t], alpha_bar[t]) from the flat SMEM table via Pallas."""
    t = jnp.asarray(t)
    orig_shape = t.shape
    t_flat = t.reshape(-1).astype(jnp.int32)
    B = t_flat.shape[0]

    if B == 0:  # guard: nothing to launch for an empty batch
        empty = jnp.zeros(orig_shape, jnp.float32)
        return empty, empty

    # Torch-style indexing for t in [-T, T-1]; anything else is clamped.
    t_idx = jnp.where(t_flat < 0, t_flat + num_time_steps, t_flat)
    t_idx = jnp.clip(t_idx, 0, num_time_steps - 1)

    out = pl.pallas_call(
        _ddpm_gather_kernel,
        out_shape=jax.ShapeDtypeStruct((2 * B,), jnp.float32),
        grid_spec=pltpu.PrefetchScalarGridSpec(
            num_scalar_prefetch=1,                       # t -> SMEM, positional
            grid=(1,),
            in_specs=[pl.BlockSpec(memory_space=pltpu.MemorySpace.SMEM)],
            out_specs=pl.BlockSpec(memory_space=pltpu.MemorySpace.SMEM),
        ),
        compiler_params=pltpu.CompilerParams(
            dimension_semantics=("arbitrary",),
        ),
        cost_estimate=pl.CostEstimate(
            flops=2 * B, transcendentals=0,
            bytes_accessed=(2 * t_pad + 3 * B) * 4),
    )(t_idx, table_flat)

    beta_t = out[:B].reshape(orig_shape)
    alpha_t = out[B:2 * B].reshape(orig_shape)
    return beta_t, alpha_t


# --------------------------- module construction --------------------------- #
class DDPMSchedulerPallas:
    """JAX/Pallas port of DDPM_Scheduler: forward(t) -> (beta[t], alpha_bar[t])."""

    def __init__(self, num_time_steps: int = 1000):
        self.num_time_steps = num_time_steps
        # Init-time constant buffers (matches nn.Module __init__; not hot path).
        self.beta = jnp.linspace(0.0001, 0.02, num_time_steps, dtype=jnp.float32)
        self.alpha = jnp.cumprod(1.0 - self.beta)

        # Flat SMEM table: [0:T] = beta, [T_pad:T_pad+T] = alpha_bar.
        self.t_pad = _round_up(num_time_steps, 128)
        tab = jnp.zeros((2 * self.t_pad,), dtype=jnp.float32)
        tab = tab.at[:num_time_steps].set(self.beta)
        tab = tab.at[self.t_pad:self.t_pad + num_time_steps].set(self.alpha)
        self.table = tab

    def __call__(self, t):
        return ddpm_gather(t, self.table, self.num_time_steps, self.t_pad)

    def reference(self, t):
        # Pure-JAX reference of the same forward for a correctness check.
        return self.beta[t], self.alpha[t]


# ----------------------------------- main ---------------------------------- #
if __name__ == "__main__":
    key = jax.random.PRNGKey(0)

    num_time_steps = 1000
    B = 2

    sched = DDPMSchedulerPallas(num_time_steps=num_time_steps)
    t = jax.random.randint(key, (B,), 0, num_time_steps)   # (2,) int32 timesteps

    beta_t, alpha_t = sched(t)
    beta_t, alpha_t = jax.block_until_ready((beta_t, alpha_t))

    beta_ref, alpha_ref = sched.reference(t)
    assert beta_t.shape == (B,) and alpha_t.shape == (B,)
    assert jnp.allclose(beta_t, beta_ref, atol=1e-7, rtol=1e-6)
    assert jnp.allclose(alpha_t, alpha_ref, atol=1e-7, rtol=1e-6)

    print("KERNEL_OK")
</pallas_src>

<mosaic_0001>
module attributes {stable_mosaic.version = 11 : i64} {
  func.func @_ddpm_gather_kernel(%arg0: i32, %arg1: memref<2xi32, #tpu.memory_space<smem>>, %arg2: memref<2048xf32, #tpu.memory_space<smem>>, %arg3: memref<4xf32, #tpu.memory_space<smem>>) attributes {dimension_semantics = [#tpu.dimension_semantics<arbitrary>], iteration_bounds = array<i64: 1>, scalar_prefetch = 1 : i64, scratch_operands = 0 : i64, tpu.core_type = #tpu.core_type<tc>, window_params = [{transform_indices = @transform_0, window_bounds = array<i64: 2048>}, {transform_indices = @transform_1, window_bounds = array<i64: 4>}]} {
    %c0_i32 = arith.constant 0 : i32
    %0 = arith.index_cast %c0_i32 : i32 to index
    %1 = memref.load %arg1[%0] : memref<2xi32, #tpu.memory_space<smem>>
    %2 = arith.index_cast %1 : i32 to index
    %3 = memref.load %arg2[%2] : memref<2048xf32, #tpu.memory_space<smem>>
    %4 = arith.index_cast %c0_i32 : i32 to index
    %5 = memref.load %arg3[%4] : memref<4xf32, #tpu.memory_space<smem>>
    memref.store %3, %arg3[%4] : memref<4xf32, #tpu.memory_space<smem>>
    %c1024_i32 = arith.constant 1024 : i32
    %6 = arith.addi %c1024_i32, %1 : i32
    %7 = arith.index_cast %6 : i32 to index
    %8 = memref.load %arg2[%7] : memref<2048xf32, #tpu.memory_space<smem>>
    %c2_i32 = arith.constant 2 : i32
    %9 = arith.addi %c2_i32, %c0_i32 : i32
    %10 = arith.index_cast %9 : i32 to index
    %11 = memref.load %arg3[%10] : memref<4xf32, #tpu.memory_space<smem>>
    memref.store %8, %arg3[%10] : memref<4xf32, #tpu.memory_space<smem>>
    %c1_i32 = arith.constant 1 : i32
    %12 = arith.index_cast %c1_i32 : i32 to index
    %13 = memref.load %arg1[%12] : memref<2xi32, #tpu.memory_space<smem>>
    %14 = arith.index_cast %13 : i32 to index
    %15 = memref.load %arg2[%14] : memref<2048xf32, #tpu.memory_space<smem>>
    %16 = arith.index_cast %c1_i32 : i32 to index
    %17 = memref.load %arg3[%16] : memref<4xf32, #tpu.memory_space<smem>>
    memref.store %15, %arg3[%16] : memref<4xf32, #tpu.memory_space<smem>>
    %c1024_i32_0 = arith.constant 1024 : i32
    %18 = arith.addi %c1024_i32_0, %13 : i32
    %19 = arith.index_cast %18 : i32 to index
    %20 = memref.load %arg2[%19] : memref<2048xf32, #tpu.memory_space<smem>>
    %c2_i32_1 = arith.constant 2 : i32
    %21 = arith.addi %c2_i32_1, %c1_i32 : i32
    %22 = arith.index_cast %21 : i32 to index
    %23 = memref.load %arg3[%22] : memref<4xf32, #tpu.memory_space<smem>>
    memref.store %20, %arg3[%22] : memref<4xf32, #tpu.memory_space<smem>>
    %c2_i32_2 = arith.constant 2 : i32
    return
  }
  func.func @transform_0(%arg0: i32, %arg1: memref<2xi32, #tpu.memory_space<smem>>) -> i32 {
    %c0_i32 = arith.constant 0 : i32
    %c0_i32_0 = arith.constant 0 : i32
    return %c0_i32 : i32
  }
  func.func @transform_1(%arg0: i32, %arg1: memref<2xi32, #tpu.memory_space<smem>>) -> i32 {
    %c0_i32 = arith.constant 0 : i32
    %c0_i32_0 = arith.constant 0 : i32
    return %c0_i32 : i32
  }
}

</mosaic_0001>

<bundles_post_ra>
// kernel: tpu_custom_call.1
= control target key start
LH: loop header
LB: loop body
LE: loop exit
PB: predicated region body
PF: predicated region fallthrough
CT: control target
= control target key end

     0   :  { %s109_s12 = smov [#allocation3]   ;;  %s136_s0 = inlined_call_operand.hbm [shape: s32[2], index: 0, kind: input, shape index: {}]   ;;  %s137_s1 = inlined_call_operand.hbm [shape: f32[2048], index: 1, kind: input, shape index: {}]   ;;  %s138_s2 = inlined_call_operand.hbm [shape: f32[4], index: 2, kind: output, shape index: {}]  }
   0x1   :  { %s8_s11 = sshll.u32 %s136_s0, 4  ;;  %s9_s11 = int_to_ptr.hbm [resolvable:$true] %s8_s11 }
   0x2   :  { %11 = dma.hbm_to_smem %s9_s11, 16, %s109_s12, [#allocation2] }
   0x3   :  { %103 = dma.done.wait [#allocation2], 16 }
   0x4   :  { %104 = vsyncadd [#allocation2], 4294967280 }
   0x5   :  { %14 = sfence }
   0x6   :  { %15 = vsyncpa [#allocation5], 0 }
   0x7   :  { %16 = vsyncpa [#allocation6], 0  ;;  %s22_s15 = sshll.u32 %s137_s1, 4  ;;  %s110_s16 = smov [#allocation4]   ;;  %s23_s15 = int_to_ptr.hbm [resolvable:$true] %s22_s15 }
   0x8   :  { %25 = dma.hbm_to_smem %s23_s15, 256, %s110_s16, [#allocation5]  }
   0x9   :  { %105 = dma.done.wait [#allocation5], 256  }
   0xa   :  { %106 = vsyncadd [#allocation5], 4294967040 }
   0xb   :  { %30 = sfence }
   0xc   :  { %s31_s17 = sld [smem:[#allocation3]]  ;;  %s52_s26 = sshll.u32 %s138_s2, 4  ;;  %s53_s26 = int_to_ptr.hbm [resolvable:$true] %s52_s26 }
   0xd   :  { %s63_s0 = sld [smem:[#allocation3 + $0x1]]  ;;  %s111_s1 = smov [#allocation7]  }
  0x12   :  { %s32_s18 = sld [smem:[#allocation4 + %s31_s17]]  ;;  %s35_s19 = sadd.s32 1024, %s31_s17 }
  0x13   :  { %s36_s20 = sld [smem:[#allocation4 + %s35_s19]]  ;;  %s43_s21 = sadd.s32 1024, %s63_s0 }
  0x14   :  { %s40_s22 = sld [smem:[#allocation4 + %s63_s0]] }
  0x15   :  { %s44_s23 = sld [smem:[#allocation4 + %s43_s21]] }
  0x18   :  { %34 = sst [smem:[#allocation7]] %s32_s18 }
  0x19   :  { %38 = sst [smem:[#allocation7 + $0x2]] %s36_s20 }
  0x1a   :  { %42 = sst [smem:[#allocation7 + $0x1]] %s40_s22 }
  0x1b   :  { %46 = sst [smem:[#allocation7 + $0x3]] %s44_s23 }
  0x1c   :  { %55 = dma.smem_to_hbm %s111_s1, 16, %s53_s26, [#allocation6]  }
  0x1d   :  { %107 = dma.done.wait [#allocation6], 16  }
  0x1e   :  { %108 = vsyncadd [#allocation6], 4294967280 }
  0x1f   :  { %60 = sfence }
  0x20   :  { %61 = vsyncpa [#allocation5], 1 }
  0x21   :  { %62 = vsyncpa [#allocation6], 1 }

</bundles_post_ra>
